<compile_context>
chip_gen: v6e
topology: v6e:2x2x1
jax: 0.10.0
libtpu: 0.0.40
codegen_flags: <defaults>
</compile_context>

<pallas_src>
import jax
import jax.numpy as jnp
from jax.experimental import pallas as pl
from jax.experimental.pallas import tpu as pltpu

NUM_CLASSES = 17
LANE = 128                   # lane-dense padded logit width (multiple of 128)
_OUT_DTYPE = jnp.float32     # logits in f32 (MXU accumulator dtype)

_SINGLE_BUFFER_OK = None     # lazily probed: pipeline_mode=pl.Buffered(1) support


def _classifier_kernel(feat_ref, wt_ref, b_ref, out_ref):
    # out[TB, 128] = feat[TB, F] @ Wt[F, 128] + bias[1, 128]   (f32 MXU accumulate)
    acc = jnp.dot(feat_ref[...], wt_ref[...], preferred_element_type=jnp.float32)
    out_ref[...] = (acc + b_ref[...]).astype(out_ref.dtype)


def prepare_classifier_params(weight, bias, param_dtype=jnp.bfloat16):
    """One-time (init) parameter prep: transpose + zero-pad to a lane-dense slab.

    weight: (17, F) PyTorch Linear convention; bias: (17,).
    Returns wt_pad (F, 128) in `param_dtype` (bf16 halves the resident-weight HBM
    read) and b_pad (1, 128) in f32 (added to the f32 accumulator).
    NOT part of the per-call hot path.
    """
    o, f = weight.shape
    wt_pad = (jnp.zeros((f, LANE), dtype=param_dtype)
              .at[:, :o].set(weight.T.astype(param_dtype)))
    b_pad = (jnp.zeros((1, LANE), dtype=jnp.float32)
             .at[0, :o].set(bias.astype(jnp.float32)))
    return wt_pad, b_pad


def _vmem_budget_bytes():
    """Per-chip VMEM budget for this kernel's pipeline (conservative)."""
    try:
        cap = int(getattr(pltpu.get_tpu_info(), "vmem_capacity_bytes", 64 << 20))
    except Exception:           # unknown chip / interpret mode
        cap = 64 << 20          # v7x per-TC physical size: smallest of the 3 gens
    # Half of physical VMEM, capped at 28 MiB: fits v7x (64 MiB physical / 32 MiB
    # scoped default) with headroom, and is plenty on v5e/v6e (128 MiB physical).
    return min(cap // 2, 28 << 20)


def _round_down8(n):
    return max(8, (n // 8) * 8)


def _round_up8(n):
    return ((n + 7) // 8) * 8


def _pick_batch_tile(B, F, feat_isz, wt_isz, out_isz, budget):
    """Largest batch tile (multiple of 8, or the whole batch) fitting the budget."""
    resident = F * LANE * wt_isz + LANE * 4           # single-buffered weight + bias
    per_row = 2 * F * feat_isz + 2 * LANE * out_isz   # double-buffered feat + out
    usable = int(budget * 0.85) - resident
    tb = max(8, usable // per_row)
    tb = min(B, tb)
    # v7x megacore: guarantee >= 2 "parallel" grid steps whenever B >= 16 so both
    # TensorCores get a share of the batch (harmless extra step on 1-TC chips).
    if B >= 16:
        tb = min(tb, _round_up8(pl.cdiv(B, 2)))
    if tb < B:
        tb = _round_down8(tb)                         # (8,128) tiling rule
    needed = resident + tb * per_row
    return int(tb), int(needed)


def _single_buffer_supported():
    """Eager probe: does this build accept pipeline_mode=pl.Buffered(1)?"""
    if not hasattr(pl, "Buffered"):
        return False

    def _copy(x_ref, o_ref):
        o_ref[...] = x_ref[...]

    try:
        x = jnp.zeros((8, 128), jnp.float32)
        out = pl.pallas_call(
            _copy,
            out_shape=jax.ShapeDtypeStruct((8, 128), jnp.float32),
            grid=(1,),
            in_specs=[pl.BlockSpec((8, 128), lambda i: (0, 0),
                                   pipeline_mode=pl.Buffered(1))],
            out_specs=pl.BlockSpec((8, 128), lambda i: (0, 0)),
        )(x)
        jax.block_until_ready(out)
        return True
    except Exception:
        return False


def _resident_spec(shape):
    """Constant-index resident operand; single-buffered when supported."""
    global _SINGLE_BUFFER_OK
    if _SINGLE_BUFFER_OK is None:
        _SINGLE_BUFFER_OK = _single_buffer_supported()
    index_map = lambda i: (0, 0)
    if _SINGLE_BUFFER_OK:
        return pl.BlockSpec(shape, index_map, pipeline_mode=pl.Buffered(1))
    return pl.BlockSpec(shape, index_map)


def classifier_pallas(feat, wt_pad, b_pad, *, slice_logits=True):
    """Pallas nn.Linear(F, 17): feat @ W.T + b, lane-dense output, batch-tiled."""
    B, F = feat.shape
    feat_isz = jnp.dtype(feat.dtype).itemsize
    wt_isz = jnp.dtype(wt_pad.dtype).itemsize
    out_isz = jnp.dtype(_OUT_DTYPE).itemsize

    budget = _vmem_budget_bytes()
    tb, needed = _pick_batch_tile(B, F, feat_isz, wt_isz, out_isz, budget)
    grid = (pl.cdiv(B, tb),)

    out_pad = pl.pallas_call(
        _classifier_kernel,
        out_shape=jax.ShapeDtypeStruct((B, LANE), _OUT_DTYPE),
        grid_spec=pltpu.PrefetchScalarGridSpec(
            num_scalar_prefetch=0,
            grid=grid,
            in_specs=[
                pl.BlockSpec((tb, F), lambda i: (i, 0)),   # feat tile (streamed)
                _resident_spec((F, LANE)),                 # weight (resident, 1-buf)
                _resident_spec((1, LANE)),                 # bias   (resident, 1-buf)
            ],
            out_specs=pl.BlockSpec((tb, LANE), lambda i: (i, 0)),
        ),
        compiler_params=pltpu.CompilerParams(
            dimension_semantics=("parallel",),
            vmem_limit_bytes=int(max(budget, int(needed * 1.25))),
        ),
        cost_estimate=pl.CostEstimate(
            flops=2 * B * F * LANE,
            transcendentals=0,
            bytes_accessed=(B * F * feat_isz + F * LANE * wt_isz
                            + LANE * jnp.dtype(b_pad.dtype).itemsize
                            + B * LANE * out_isz),
        ),
    )(feat, wt_pad, b_pad)

    if slice_logits:
        # Separate XLA copy (read Bx128 + write Bx17). Consumers that can eat the
        # padded slab should pass slice_logits=False (extra lanes are exact zeros).
        return out_pad[:, :NUM_CLASSES]
    return out_pad


@jax.jit
def model_forward(x, wt_pad, b_pad):
    """Mirrors Model.forward: returns (feat, out)."""
    feat = x  # extractor with its final Linear replaced by Identity (see TODO above)
    out = classifier_pallas(feat, wt_pad, b_pad)
    return feat, out


if __name__ == "__main__":
    key = jax.random.PRNGKey(0)
    k_x1, k_x2, k_w, k_b = jax.random.split(key, 4)

    FEAT = 32    # cfg['feat'] — backbone feature width (small synthetic size)

    # Deterministic Linear(FEAT, 17) parameters (PyTorch-style uniform init), f32.
    bound = 1.0 / (FEAT ** 0.5)
    weight = jax.random.uniform(k_w, (NUM_CLASSES, FEAT), jnp.float32, -bound, bound)
    bias = jax.random.uniform(k_b, (NUM_CLASSES,), jnp.float32, -bound, bound)

    # One-time parameter prep (init-time, off the hot path): bf16 lane-dense slab.
    wt_pad, b_pad = prepare_classifier_params(weight, bias)
    wt_pad, b_pad = jax.block_until_ready((wt_pad, b_pad))

    # Reference uses the exact bf16-quantized parameters the kernel sees.
    w_eff = wt_pad[:, :NUM_CLASSES].astype(jnp.float32)   # (FEAT, 17)
    b_eff = b_pad[0, :NUM_CLASSES]                        # (17,) f32

    # B=2: single-step grid.  B=24: multi-step grid (megacore split) + tail block.
    for B, kx in ((2, k_x1), (24, k_x2)):
        x = jax.random.normal(kx, (B, FEAT), dtype=jnp.float32).astype(jnp.bfloat16)
        feat, out = model_forward(x, wt_pad, b_pad)
        feat, out = jax.block_until_ready((feat, out))

        ref = x.astype(jnp.float32) @ w_eff + b_eff
        assert feat.shape == (B, FEAT) and out.shape == (B, NUM_CLASSES)
        assert out.dtype == jnp.float32
        assert jnp.allclose(out, ref, atol=2e-3, rtol=2e-3)
        assert jnp.allclose(feat.astype(jnp.float32), x.astype(jnp.float32))

    print("KERNEL_OK")
</pallas_src>

<mosaic_0001>
module attributes {stable_mosaic.version = 11 : i64} {
  func.func @_classifier_kernel(%arg0: i32, %arg1: memref<2x32xbf16, #tpu.memory_space<vmem>>, %arg2: memref<32x128xbf16, #tpu.memory_space<vmem>>, %arg3: memref<1x128xf32, #tpu.memory_space<vmem>>, %arg4: memref<2x128xf32, #tpu.memory_space<vmem>>) attributes {dimension_semantics = [#tpu.dimension_semantics<parallel>], iteration_bounds = array<i64: 1>, scalar_prefetch = 0 : i64, scratch_operands = 0 : i64, tpu.core_type = #tpu.core_type<tc>, window_params = [{transform_indices = @transform_0, window_bounds = array<i64: 2, 32>}, {pipeline_mode = #tpu.pipeline_mode<synchronous>, transform_indices = @transform_1, window_bounds = array<i64: 32, 128>}, {pipeline_mode = #tpu.pipeline_mode<synchronous>, transform_indices = @transform_2, window_bounds = array<i64: 1, 128>}, {transform_indices = @transform_3, window_bounds = array<i64: 2, 128>}]} {
    %c0 = arith.constant 0 : index
    %c0_0 = arith.constant 0 : index
    %0 = vector.load %arg1[%c0, %c0_0] : memref<2x32xbf16, #tpu.memory_space<vmem>>, vector<2x32xbf16>
    %c0_1 = arith.constant 0 : index
    %c0_2 = arith.constant 0 : index
    %1 = vector.load %arg2[%c0_1, %c0_2] : memref<32x128xbf16, #tpu.memory_space<vmem>>, vector<32x128xbf16>
    %cst = arith.constant dense<0.000000e+00> : vector<2x128xf32>
    %2 = tpu.matmul %0, %1, %cst {dimension_numbers = #tpu.dot_dimension_numbers<[1], [0], [0], [1], [0, 0, 1, 1], [], []>} : vector<2x32xbf16>, vector<32x128xbf16>, vector<2x128xf32> -> vector<2x128xf32>
    %c0_3 = arith.constant 0 : index
    %c0_4 = arith.constant 0 : index
    %3 = vector.load %arg3[%c0_3, %c0_4] : memref<1x128xf32, #tpu.memory_space<vmem>>, vector<1x128xf32>
    %4 = vector.broadcast %3 : vector<1x128xf32> to vector<2x128xf32>
    %5 = arith.addf %2, %4 : vector<2x128xf32>
    %c0_5 = arith.constant 0 : index
    %c0_6 = arith.constant 0 : index
    %6 = vector.load %arg4[%c0_5, %c0_6] : memref<2x128xf32, #tpu.memory_space<vmem>>, vector<2x128xf32>
    tpu.vector_store %arg4[%c0_5, %c0_6], %5 {strides = array<i32>} : memref<2x128xf32, #tpu.memory_space<vmem>>, vector<2x128xf32>,
    return
  }
  func.func @transform_0(%arg0: i32) -> (i32, i32) {
    %c0_i32 = arith.constant 0 : i32
    %c0_i32_0 = arith.constant 0 : i32
    return %arg0, %c0_i32 : i32, i32
  }
  func.func @transform_1(%arg0: i32) -> (i32, i32) {
    %c0_i32 = arith.constant 0 : i32
    %c0_i32_0 = arith.constant 0 : i32
    %c0_i32_1 = arith.constant 0 : i32
    return %c0_i32, %c0_i32_0 : i32, i32
  }
  func.func @transform_2(%arg0: i32) -> (i32, i32) {
    %c0_i32 = arith.constant 0 : i32
    %c0_i32_0 = arith.constant 0 : i32
    %c0_i32_1 = arith.constant 0 : i32
    return %c0_i32, %c0_i32_0 : i32, i32
  }
  func.func @transform_3(%arg0: i32) -> (i32, i32) {
    %c0_i32 = arith.constant 0 : i32
    %c0_i32_0 = arith.constant 0 : i32
    return %arg0, %c0_i32 : i32, i32
  }
}

</mosaic_0001>

<bundles_post_ra>
// kernel: model_forward.1
= control target key start
LH: loop header
LB: loop body
LE: loop exit
PB: predicated region body
PF: predicated region fallthrough
CT: control target
= control target key end

     0   :  { %8 = vsyncpa [#allocation3], 0  ;;  %s256_s0 = inlined_call_operand.vmem [shape: bf16[2,32], index: 0, kind: input, shape index: {}]   ;;  %s257_s1 = inlined_call_operand.hbm [shape: bf16[32,128], index: 1, kind: input, shape index: {}]   ;;  %s258_s2 = inlined_call_operand.hbm [shape: f32[1,128], index: 2, kind: input, shape index: {}]   ;;  %s259_s3 = inlined_call_operand.hbm [shape: f32[2,128], index: 3, kind: output, shape index: {}]  }
   0x1   :  { %9 = vsyncpa [#allocation6], 0 }
   0x2   :  { %10 = vsyncpa [#allocation4], 0  ;;  %s217_s12 = smov [#allocation2]  }
   0x3   :  { %s18_s13 = sshll.u32 %s217_s12, 4  ;;  %s19_s13 = int_to_ptr.vmem [resolvable:$true] %s18_s13 }
   0x4   :  { %s159_s14 = scalar_lea.vmem %s19_s13, 256  ;;  %p164_p1 = scmp.lt.s32.totalorder %s19_s13, %s19_s13 }
   0x5   :  { %p160_p0 = scmp.ne.s32.totalorder %s19_s13, %s159_s14  ;;  %p165_p2 = scmp.lt.s32.totalorder %s159_s14, %s159_s14 }
   0x7   :  { %p166_p3 = por %p165_p2, %p164_p1 }
   0x9   :  { %p167_p4 = pnand %p166_p3, %p160_p0 }
   0xb   :  { %170 = shalt.err (!%p167_p4)
}
   0xc   :  { %s218_s15 = smov 64   ;;  %s219_s16 = smov 4  }
   0xd   :  { %24 = dma.hbm_to_vmem [thread:$0]  %s257_s1, 256, %s19_s13, [#allocation3], %s218_s15, %s218_s15, %s219_s16  }
   0xe   :  { %s220_s19 = smov [#allocation5]  }
   0xf   :  { %s31_s20 = sshll.u32 %s220_s19, 4  ;;  %s32_s20 = int_to_ptr.vmem [resolvable:$true] %s31_s20 }
  0x10   :  { %s179_s21 = scalar_lea.vmem %s32_s20, 16  ;;  %s183_s22 = scalar_lea.vmem %s32_s20, 32 }
  0x11   :  { %p180_p5 = scmp.ne.s32.totalorder %s32_s20, %s179_s21  ;;  %p184_p6 = scmp.lt.s32.totalorder %s32_s20, %s32_s20 }
  0x12   :  { %p185_p7 = scmp.lt.s32.totalorder %s183_s22, %s179_s21 }
  0x14   :  { %p186_p8 = por %p185_p7, %p184_p6 }
  0x16   :  { %p187_p9 = pnand %p186_p8, %p180_p5 }
  0x18   :  { %190 = shalt.err (!%p187_p9)
}
  0x19   :  { %34 = dma.hbm_to_vmem [thread:$0]  %s258_s2, 16, %s32_s20, [#allocation6]  }
  0x1a   :  { %211 = dma.done.wait [#allocation3], 256  }
  0x1b   :  { %212 = vsyncadd [#allocation3], 4294967040 }
  0x1c   :  { %213 = dma.done.wait [#allocation6], 16  }
  0x1d   :  { %214 = vsyncadd [#allocation6], 4294967280  ;;  %v221_v0 = vmov 0.0   ;;  %vm222_vm0 = vmmov 0   ;;  %v149_v1 = vld [vmem:[#allocation2 + $0x8] sm:$0xff]   ;;  %v150_v2 = vld [vmem:[#allocation2] sm:$0xff]  }
  0x1e   :  { %134 = vmatprep.subr.bf16.mxu0 %v221_v0  ;;  %138 = vmatprep.mubr.msk.bf16.mxu0 %vm222_vm0, %v221_v0  ;;  %v42_v3 = vld [vmem:[%s256_s0] sm:$0x1]  ;;  %vm66_vm1 = vcmask 261120   ;;  %v127_v4 = vld [vmem:[#allocation5] ss:$0 sm:$0xff]  ;;  %s223_s2 = smov [#allocation7]  }
  0x1f   :  { %135 = vmatpush3.bf16.msra.mxu0 %v149_v1  ;;  %s117_s26 = sshll.u32 %s223_s2, 4  ;;  %s118_s26 = int_to_ptr.vmem [resolvable:$true] %s117_s26 }
  0x20   :  { %136 = vmatprep.subr.bf16.mxu0 %v221_v0  ;;  %s191_s27 = scalar_lea.vmem %s118_s26, 32  ;;  %p196_p11 = scmp.lt.s32.totalorder %s118_s26, %s118_s26 }
  0x21   :  { %p192_p10 = scmp.ne.s32.totalorder %s118_s26, %s191_s27  ;;  %p197_p12 = scmp.lt.s32.totalorder %s191_s27, %s191_s27 }
  0x23   :  { %137 = vmatpush3.bf16.msra.mxu0 %v150_v2  ;;  %p198_p13 = por %p197_p12, %p196_p11 }
  0x25   :  { %p199_p0 = pnand %p198_p13, %p192_p10 }
  0x26   :  { %139 = vmatmul.mubr.msk.bf16.vlgmr.msra.gmra.mxu0 %vm66_vm1, %v42_v3 }
  0xe6   :  { %v104_v5 = vpop.f32.mrf.mxu0 }
  0xe7   :  { %v105_v6 = vadd.f32 %v127_v4, %v104_v5 }
  0xe8   :  { %v140_v7 = vpop.f32.mrf.mxu0 }
  0xe9   :  { %110 = vst [vmem:[#allocation7] sm:$0x3] %v105_v6 }
  0xea   :  { %v107_v8 = vpop.f32.mrf.mxu0 }
  0xeb   :  { %202 = shalt.err (!%p199_p0)
}
  0xec   :  { %120 = dma.vmem_to_hbm [thread:$0]  %s118_s26, 32, %s259_s3, [#allocation4]   ;;  %v141_v9 = vpop.f32.mrf.mxu0 }
  0xed   :  { %215 = dma.done.wait [#allocation4], 32  }
  0xee   :  { %216 = vsyncadd [#allocation4], 4294967264 }
  0xef   :  { %124 = vsyncpa [#allocation3], 1 }
  0xf0   :  { %125 = vsyncpa [#allocation6], 1 }
  0xf1   :  { %126 = vsyncpa [#allocation4], 1 }

</bundles_post_ra>
